<compile_context>
chip_gen: v7x
topology: tpu7x:2x2x1
jax: 0.10.0
libtpu: 0.0.40
codegen_flags: <defaults>
</compile_context>

<pallas_src>
import jax
import jax.numpy as jnp
from jax.experimental import pallas as pl
from jax.experimental.pallas import tpu as pltpu


def _round_up(x, n):
    return ((x + n - 1) // n) * n


def _pick_tn(flat):
    """Lane-dense N tile: multiple of 128 dividing flat, >= 2 tiles when possible."""
    if flat % 128 != 0 or flat < 256:
        return flat
    cands = [d for d in range(128, flat, 128) if flat % d == 0]
    if not cands:
        return flat
    target = min(512, flat // 2)
    good = [d for d in cands if d <= target]
    return max(good) if good else min(cands)


# --------------------------------- Pallas kernel ----------------------------------

def flinear_kernel(x_ref, wt_ref, b_ref, y_ref):
    # Canonical [M,K] x [K,N] matmul on the pre-transposed weight; f32 accumulation
    # on the MXU, f32 bias add in the epilogue (safe on v5e which has no bf16 VPU).
    acc = jnp.dot(x_ref[...], wt_ref[...], preferred_element_type=jnp.float32)
    y_ref[...] = acc + b_ref[...]


# ----------------------------------- wrapper ---------------------------------------

def flinear_forward(z, weight, bias, *, tm=512, use_bf16=False):
    """Forward of Flinear: z (B, C, size, size) -> (B, C, size, size)."""
    b, c, h, w = z.shape
    assert h == w, "Flinear assumes square spatial dims"
    flat = h * w
    assert weight.shape == (flat, flat) and bias.shape == (flat,)
    m = b * c

    # Contiguous reshape only — no transpose passes over the activation tensor.
    x2 = z.reshape(m, flat)

    # One-time HBM-side transpose so the kernel contracts (((1,),(0,)),((),())).
    # TODO(synk): store the parameter pre-transposed to avoid even this per-call op.
    wt = weight.T

    if use_bf16:
        x2 = x2.astype(jnp.bfloat16)
        wt = wt.astype(jnp.bfloat16)
    bias2 = bias.reshape(1, flat).astype(jnp.float32)

    # N (output-column) split: streams weight column slices, feeds both v7x TCs.
    tn = _pick_tn(flat)
    n_tiles = flat // tn

    # Sublane-aligned M tile; clamp so the per-step VMEM footprint stays modest
    # (v7x: 64 MiB physical / 32 MiB default scoped; v5e: 16 MiB default scoped).
    tm = min(tm, _round_up(m, 8))
    itemsize = 2 if use_bf16 else 4

    def _step_vmem(tm_):
        return (2 * tm_ * flat * itemsize      # x tile (double-buffered)
                + 2 * flat * tn * itemsize     # weight slice (double-buffered)
                + 2 * tm_ * tn * 4             # out tile
                + 2 * tn * 4)                  # bias slice

    while _step_vmem(tm) > (24 << 20) and tm > 128:
        tm //= 2

    m_tiles = pl.cdiv(m, tm)   # ragged last M block is masked by Pallas; no jnp.pad

    # If there is no N split, weight/bias blocks are grid-invariant: single-buffer
    # them to halve the resident-weight VMEM footprint.
    w_spec_kwargs = {}
    b_spec_kwargs = {}
    if n_tiles == 1:
        w_spec_kwargs = dict(pipeline_mode=pl.Buffered(1))
        b_spec_kwargs = dict(pipeline_mode=pl.Buffered(1))

    cost = pl.CostEstimate(
        flops=2 * m * flat * flat,
        transcendentals=0,
        bytes_accessed=(m * flat * itemsize          # x read
                        + m_tiles * flat * flat * itemsize  # weight (re-read per M tile)
                        + m * flat * 4               # y write
                        + flat * 4),                 # bias
    )

    y2 = pl.pallas_call(
        flinear_kernel,
        out_shape=jax.ShapeDtypeStruct((m, flat), jnp.float32),
        grid_spec=pltpu.PrefetchScalarGridSpec(
            num_scalar_prefetch=0,
            grid=(m_tiles, n_tiles),
            in_specs=[
                pl.BlockSpec((tm, flat), lambda i, j: (i, 0)),                  # x tile
                pl.BlockSpec((flat, tn), lambda i, j: (0, j), **w_spec_kwargs),  # W.T slice
                pl.BlockSpec((1, tn), lambda i, j: (0, j), **b_spec_kwargs),     # bias slice
            ],
            out_specs=pl.BlockSpec((tm, tn), lambda i, j: (i, j)),
        ),
        compiler_params=pltpu.CompilerParams(
            dimension_semantics=("parallel", "parallel"),  # both axes independent
        ),
        cost_estimate=cost,
    )(x2, wt, bias2)

    return y2.reshape(b, c, h, w)


# ----------------------------- parameter setup (glue) -------------------------------

def init_flinear_params(size, key):
    """Deterministic nn.Linear(flat, flat)-style init (uniform +/- 1/sqrt(flat))."""
    flat = size * size
    kw, kb = jax.random.split(key)
    bound = 1.0 / (flat ** 0.5)
    weight = jax.random.uniform(kw, (flat, flat), jnp.float32, -bound, bound)
    bias = jax.random.uniform(kb, (flat,), jnp.float32, -bound, bound)
    return weight, bias


# ------------------------------------- main -----------------------------------------

if __name__ == "__main__":
    B, C, SIZE = 2, 4, 16           # z: (2, 4, 16, 16), flat = 256
    key = jax.random.PRNGKey(0)
    kp, kx = jax.random.split(key)

    weight, bias = init_flinear_params(SIZE, kp)
    z = jax.random.normal(kx, (B, C, SIZE, SIZE), dtype=jnp.float32)

    # Pure-JAX reference: Linear applied to the flattened spatial dims.
    z_flat = z.reshape(B, C, SIZE * SIZE)
    ref = (z_flat @ weight.T + bias).reshape(B, C, SIZE, SIZE)

    # f32 path (default): tight tolerance.
    out = flinear_forward(z, weight, bias)
    out = jax.block_until_ready(out)
    assert out.shape == (B, C, SIZE, SIZE)
    assert jnp.allclose(out, ref, atol=1e-4, rtol=1e-4)

    # bf16-input path: halves weight HBM traffic; f32 accumulation -> loose tolerance.
    out_bf16 = flinear_forward(z, weight, bias, use_bf16=True)
    out_bf16 = jax.block_until_ready(out_bf16)
    assert jnp.allclose(out_bf16, ref, atol=2e-2, rtol=2e-2)

    print("KERNEL_OK")
</pallas_src>

<mosaic_0001>
module attributes {stable_mosaic.version = 11 : i64} {
  func.func @flinear_kernel(%arg0: i32, %arg1: i32, %arg2: memref<8x256xf32, #tpu.memory_space<vmem>>, %arg3: memref<256x128xf32, #tpu.memory_space<vmem>>, %arg4: memref<1x128xf32, #tpu.memory_space<vmem>>, %arg5: memref<8x128xf32, #tpu.memory_space<vmem>>) attributes {dimension_semantics = [#tpu.dimension_semantics<parallel>, #tpu.dimension_semantics<parallel>], iteration_bounds = array<i64: 1, 2>, scalar_prefetch = 0 : i64, scratch_operands = 0 : i64, tpu.core_type = #tpu.core_type<tc>, window_params = [{transform_indices = @transform_0, window_bounds = array<i64: 8, 256>}, {transform_indices = @transform_1, window_bounds = array<i64: 256, 128>}, {transform_indices = @transform_2, window_bounds = array<i64: 1, 128>}, {transform_indices = @transform_3, window_bounds = array<i64: 8, 128>}]} {
    %c0 = arith.constant 0 : index
    %c0_0 = arith.constant 0 : index
    %0 = vector.load %arg2[%c0, %c0_0] : memref<8x256xf32, #tpu.memory_space<vmem>>, vector<8x256xf32>
    %c0_1 = arith.constant 0 : index
    %c0_2 = arith.constant 0 : index
    %1 = vector.load %arg3[%c0_1, %c0_2] : memref<256x128xf32, #tpu.memory_space<vmem>>, vector<256x128xf32>
    %cst = arith.constant dense<0.000000e+00> : vector<8x128xf32>
    %2 = tpu.matmul %0, %1, %cst {dimension_numbers = #tpu.dot_dimension_numbers<[1], [0], [0], [1], [0, 0, 1, 1], [], []>} : vector<8x256xf32>, vector<256x128xf32>, vector<8x128xf32> -> vector<8x128xf32>
    %c0_3 = arith.constant 0 : index
    %c0_4 = arith.constant 0 : index
    %3 = vector.load %arg4[%c0_3, %c0_4] : memref<1x128xf32, #tpu.memory_space<vmem>>, vector<1x128xf32>
    %4 = vector.broadcast %3 : vector<1x128xf32> to vector<8x128xf32>
    %5 = arith.addf %2, %4 : vector<8x128xf32>
    %c0_5 = arith.constant 0 : index
    %c0_6 = arith.constant 0 : index
    %6 = vector.load %arg5[%c0_5, %c0_6] : memref<8x128xf32, #tpu.memory_space<vmem>>, vector<8x128xf32>
    tpu.vector_store %arg5[%c0_5, %c0_6], %5 {strides = array<i32>} : memref<8x128xf32, #tpu.memory_space<vmem>>, vector<8x128xf32>,
    return
  }
  func.func @transform_0(%arg0: i32, %arg1: i32) -> (i32, i32) {
    %c0_i32 = arith.constant 0 : i32
    %c0_i32_0 = arith.constant 0 : i32
    return %arg0, %c0_i32 : i32, i32
  }
  func.func @transform_1(%arg0: i32, %arg1: i32) -> (i32, i32) {
    %c0_i32 = arith.constant 0 : i32
    %c0_i32_0 = arith.constant 0 : i32
    return %c0_i32, %arg1 : i32, i32
  }
  func.func @transform_2(%arg0: i32, %arg1: i32) -> (i32, i32) {
    %c0_i32 = arith.constant 0 : i32
    %c0_i32_0 = arith.constant 0 : i32
    return %c0_i32, %arg1 : i32, i32
  }
  func.func @transform_3(%arg0: i32, %arg1: i32) -> (i32, i32) {
    %c0_i32 = arith.constant 0 : i32
    return %arg0, %arg1 : i32, i32
  }
}

</mosaic_0001>

<bundles_post_ra>
// kernel: tpu_custom_call.1
= control target key start
LH: loop header
LB: loop body
LE: loop exit
PB: predicated region body
PF: predicated region fallthrough
CT: control target
= control target key end

     0   :  { %8 = vsyncpa [#allocation3], 0  ;;  %s1058_s0 = inlined_call_operand.hbm [shape: f32[8,256], index: 0, kind: input, shape index: {}]   ;;  %s1059_s1 = inlined_call_operand.hbm [shape: f32[256,256], index: 1, kind: input, shape index: {}]   ;;  %s1060_s2 = inlined_call_operand.vmem [shape: f32[1,256], index: 2, kind: input, shape index: {}]   ;;  %s1061_s3 = inlined_call_operand.hbm [shape: f32[8,256], index: 3, kind: output, shape index: {}]  }
   0x1   :  { %9 = vsyncpa [#allocation6], 0 }
   0x2   :  { %11 = vsyncpa [#allocation6 + $0x1], 0 }
   0x3   :  { %12 = vsyncpa [#allocation4], 0 }
   0x4   :  { %14 = vsyncpa [#allocation4 + $0x1], 0  ;;  %s799_s12 = smov 0   ;;  %s801_s13 = smov 0  }
   0x5   :  { %s803_s14 = smov 0   ;;  %s805_s15 = smov 0  }
   0x6   :  { %s807_s16 = smov 0   ;;  %s809_s17 = smov 0  }
   0x7 LB: > { %s468_s18 = sadd.s32 4294967295, %s771_s17   ;;  %s469_s19 = sadd.s32 4294967294, %s771_s17   ;;  %s771_s17 = sphi %s809_s17, %s20_s17   ;;  %s767_s16 = sphi %s807_s16, %s1089_s16   ;;  %s763_s15 = sphi %s805_s15, %s1088_s15   ;;  %s759_s14 = sphi %s803_s14, %s1087_s14   ;;  %s755_s13 = sphi %s801_s13, %s1086_s13   ;;  %s751_s12 = sphi %s799_s12, %s1085_s12  }
   0x8   : > { %s65_s20 = sadd.s32 1, %s759_s14  ;;  %p72_p0 = scmp.ne.s32.totalorder %s759_s14, %s755_s13 }
   0x9   : > { %p73_p1 = scmp.eq.s32.totalorder %s771_s17, 0  ;;  %p78_p2 = scmp.ne.s32.totalorder %s755_s13, %s751_s12 }
   0xa   : > { %p837_p3 = scmp.eq.s32.totalorder %s468_s18, 0  ;;  %p130_p4 = scmp.eq.s32.totalorder %s468_s18, 1 }
   0xb   : > { %p841_p5 = por %p73_p1, %p72_p0  ;;  %p136_p6 = scmp.eq.s32.totalorder %s469_s19, 1 }
   0xc   : > { %s1068_s21 = scalar_select %p837_p3, 1, 0 }
   0xd   : > { %p847_p7 = por %p837_p3, %p78_p2  ;;  %p851_p8 = por %p130_p4, %p72_p0 }
   0xe   : > { %p855_p9 = por %p136_p6, %p78_p2  ;;  %p470_p10 = scmp.ge.s32.totalorder %s771_s17, 1 }
   0xf   : > { %s1070_s23 = scalar_select %p847_p7, 1, 0 }
  0x10   : > { %s1071_s24 = scalar_select %p851_p8, 1, 0 }
  0x11   : > { %s1072_s25 = scalar_select %p855_p9, 1, 0 }
  0x12   : > { %p143_p11 = scmp.lt.s32.totalorder %s771_s17, 3  ;;  %s773_s27 = smov [#allocation2]  }
  0x13   : > { %s159_s28 = sshll.u32 %s773_s27, 4  ;;  %p572_p1 = scmp.lt.s32.totalorder %s771_s17, 2  ;;  %s160_s28 = int_to_ptr.vmem [resolvable:$true] %s159_s28 }
  0x14   : > { %p862_p13 = pnand %p470_p10, %p143_p11  ;;  %s29_s4 = sadd.s32 1, %s767_s16 }
  0x15   : > { %p871_p4 = pnand %p572_p1, %p841_p5  ;;  %p882_p6 = scmp.ge.s32.totalorder %s29_s4, 2 }
  0x16   : > { %s1073_s26 = scalar_select %p862_p13, 1, 0 }
  0x17   : > { %p559_p0 = pneg %p862_p13  ;;  %s170_s6 = sand.u32 1, %s759_s14  }
  0x18   : > { %s1074_s29 = scalar_select %p871_p4, 1, 0 }
  0x19   : > { %p877_p2 = pnand %p559_p0, %p837_p3  ;;  %s627_s9 = scalar_lea.hbm %s1058_s0, 256 }
  0x1a   : > { %s1076_s5 = scalar_select %p882_p6, 1, 0 }
  0x1b   : > { %p628_p5 = scmp.ne.s32.totalorder %s1058_s0, %s627_s9  ;;  %p629_p10 = pneg %p877_p2 }
  0x1c   : > { %p634_p0 = scmp.lt.u32.totalorder %s627_s9, %s1058_s0 }
  0x1d   : > { %p630_p11 = pnand %p629_p10, %p628_p5 }
  0x1f   : > { %p631_p1 = pneg %p630_p11 }
  0x21   : > { %p636_p12 = pnand %p634_p0, %p631_p1 }
  0x23   : > { %639 = shalt.err (!%p636_p12)
}
  0x24   : > { %s640_s22 = scalar_lea.vmem %s160_s28, 256  ;;  %p648_p3 = scmp.lt.s32.totalorder %s160_s28, %s160_s28 }
  0x25   : > { %p641_p9 = scmp.ne.s32.totalorder %s160_s28, %s640_s22  ;;  %p649_p13 = scmp.lt.s32.totalorder %s640_s22, %s640_s22 }
  0x27   : > { %p643_p8 = pnand %p641_p9, %p629_p10  ;;  %p650_p4 = por %p649_p13, %p648_p3 }
  0x29   : > { %p644_p7 = pneg %p643_p8 }
  0x2b   : > { %p651_p6 = pnand %p650_p4, %p644_p7 }
  0x2d   : > { %654 = shalt.err (!%p651_p6)
}
  0x2e   : > { %562 = dma.hbm_to_vmem [thread:$0]  (!%p877_p2), %s1058_s0, 256, %s160_s28, [#allocation3]  }
  0x2f   : > { %p1077_p9 = scmp.ne.s32.totalorder %s1076_s5, 0  ;;  %s473_s8 = sshll.u32 %s170_s6, 8 }
  0x30   : > { %s474_s10 = sshll.u32 %s767_s16, 7  ;;  %s174_s19 = scalar_lea.vmem [#allocation5], %s473_s8 }
  0x31   : > { %s1091_s4 = smov (%p1077_p9, %s29_s4), 0  ;;  %s913_s18 = scalar_lea.hbm %s1059_s1, %s474_s10 }
  0x32   : > { %s62_s9 = ssub.s32 %s767_s16, %s1091_s4  ;;  %s180_s22 = sshll.u32 %s174_s19, 4  ;;  %s920_s22 = int_to_ptr.vmem [resolvable:$true] %s180_s22 }
  0x33   : > { %p63_p3 = scmp.eq.s32.totalorder %s62_s9, 0  ;;  %s922_s5 = scalar_lea.sflag [#allocation6], %s170_s6 }
  0x34   : > { %s655_s27 = scalar_lea.hbm %s913_s18, 4096  ;;  %p1078_p8 = scmp.ne.s32.totalorder %s1074_s29, 0 }
  0x35   : > { %s918_s28 = scalar_select %p63_p3, %s759_s14, %s65_s20  }
  0x36   : > { %p656_p7 = scmp.ne.s32.totalorder %s913_s18, %s655_s27  ;;  %p657_p12 = pneg %p1078_p8 }
  0x37   : > { %s660_s8 = scalar_lea.hbm %s1059_s1, 8192  ;;  %p661_p2 = scmp.lt.u32.totalorder %s913_s18, %s1059_s1 }
  0x38   : > { %p658_p13 = pnand %p657_p12, %p656_p7  ;;  %p662_p6 = scmp.lt.u32.totalorder %s660_s8, %s655_s27 }
  0x39   : > { %p664_p10 = scmp.lt.u32.totalorder %s655_s27, %s913_s18 }
  0x3a   : > { %p659_p4 = pneg %p658_p13  ;;  %p663_p5 = por %p662_p6, %p661_p2 }
  0x3c   : > { %p665_p11 = por %p664_p10, %p663_p5 }
  0x3e   : > { %p666_p1 = pnand %p665_p11, %p659_p4 }
  0x40   : > { %669 = shalt.err (!%p666_p1)
}
  0x41   : > { %s670_s20 = scalar_lea.vmem %s920_s22, 4096  ;;  %s774_s6 = smov [#allocation5]  }
  0x42   : > { %p671_p0 = scmp.ne.s32.totalorder %s920_s22, %s670_s20  ;;  %s675_s11 = sshll.u32 %s774_s6, 4  ;;  %s676_s11 = int_to_ptr.vmem [resolvable:$false] %s675_s11 }
  0x43   : > { %s677_s19 = scalar_lea.vmem %s676_s11, 8192  ;;  %p678_p7 = scmp.lt.s32.totalorder %s920_s22, %s676_s11 }
  0x44   : > { %p673_p9 = pnand %p671_p0, %p657_p12  ;;  %p679_p13 = scmp.lt.s32.totalorder %s677_s19, %s670_s20 }
  0x46   : > { %p674_p3 = pneg %p673_p9  ;;  %p680_p2 = por %p679_p13, %p678_p7 }
  0x48   : > { %p681_p6 = pnand %p680_p2, %p674_p3 }
  0x4a   : > { %684 = shalt.err (!%p681_p6)
}
  0x4b   : > { %s775_s27 = smov 256   ;;  %s776_s7 = smov 128  }
  0x4c   : > { %s777_s9 = smov 8   ;;  %p1079_p12 = scmp.ne.s32.totalorder %s1073_s26, 0 }
  0x4d   : > { %566 = dma.hbm_to_vmem [thread:$0]  (!%p1078_p8), %s913_s18, 4096, %s920_s22, %s922_s5, %s775_s27, %s776_s7, %s777_s9  }
  0x4e   : > { %198 = sbr.rel (%p1079_p12) target bundleno = 356 (0x164), region = 32  ;;  %p1080_p4 = scmp.ne.s32.totalorder (!%p1079_p12), %s1068_s21, 0 }
  0x55   : > { %738 = dma.done.wait (%p1080_p4), [#allocation3], 256  }
  0x56   : > { %740 = vsyncadd (%p1080_p4), [#allocation3], 4294967040  ;;  %s957_s8 = sand.u32 1, %s755_s13   ;;  %p1081_p8 = scmp.ne.s32.totalorder %s1070_s23, 0 }
  0x57   : > { %s477_s10 = sshll.u32 %s957_s8, 8  ;;  %s205_s30 = scalar_lea.sflag [#allocation6], %s957_s8 }
  0x58   : > { %s961_s20 = scalar_lea.vmem [#allocation5], %s477_s10 }
  0x59   : > { %742 = dma.done.wait (%p1081_p8), %s205_s30, 4096  }
  0x5a   : > { %744 = vsyncadd (%p1081_p8), %s205_s30, 4294963200  ;;  %v255_v0 = vld [vmem:[%s961_s20 + $0x80] sm:$0xff]  ;;  %v256_v1 = vld [vmem:[%s961_s20 + $0x88] sm:$0xff]  ;;  %p234_p5 = scmp.lt.s32.totalorder %s763_s15, 1  ;;  %s478_s23 = sshll.u32 %s957_s8, 3 }
  0x5b   : > { %v239_v2 = vld [vmem:[%s961_s20] sm:$0xff]  ;;  %v519_v3 = vpack.c.bf16 %v256_v1, %v255_v0  ;;  %v240_v4 = vld [vmem:[%s961_s20 + $0x8] sm:$0xff]  ;;  %v257_v5 = vld [vmem:[%s961_s20 + $0x90] sm:$0xff]  ;;  %s481_s22 = sshll.u32 %s763_s15, 7  ;;  %s233_s5 = scalar_lea.vmem [#allocation7], %s478_s23 }
  0x5c   : > { %v258_v6 = vld [vmem:[%s961_s20 + $0x98] sm:$0xff]  ;;  %v521_v7 = vpack.c.bf16 %v240_v4, %v239_v2  ;;  %v241_v9 = vld [vmem:[%s961_s20 + $0x10] sm:$0xff]  ;;  %v259_v11 = vld [vmem:[%s961_s20 + $0xa0] sm:$0xff]  ;;  %s235_s21 = scalar_select %p234_p5, %s763_s15, 1 }
  0x5d   : > { %v523_v8 = vpack.c.bf16 %v258_v6, %v257_v5  ;;  %v242_v10 = vld [vmem:[%s961_s20 + $0x18] sm:$0xff]  ;;  %520 = vmatprep.subr.bf16.mxu0 %v519_v3  ;;  %v260_v12 = vld [vmem:[%s961_s20 + $0xa8] sm:$0xff]  ;;  %v243_v15 = vld [vmem:[%s961_s20 + $0x20] sm:$0xff]  ;;  %s365_s6 = sshll.u32 %s233_s5, 4  ;;  %s1009_s27 = scalar_lea.hbm %s1061_s3, %s481_s22  ;;  %s1011_s6 = int_to_ptr.vmem [resolvable:$true] %s365_s6 }
  0x5e   : > { %522 = vmatpush3.bf16.msra.mxu0 %v521_v7  ;;  %v525_v13 = vpack.c.bf16 %v242_v10, %v241_v9  ;;  %v527_v14 = vpack.c.bf16 %v260_v12, %v259_v11  ;;  %v244_v16 = vld [vmem:[%s961_s20 + $0x28] sm:$0xff]  ;;  %v261_v17 = vld [vmem:[%s961_s20 + $0xb0] sm:$0xff]  ;;  %v262_v18 = vld [vmem:[%s961_s20 + $0xb8] sm:$0xff]  ;;  %s236_s18 = scalar_lea.vmem %s1060_s2, %s235_s21  ;;  %s350_s7 = scalar_lea.sflag [#allocation4], %s957_s8 }
  0x5f   : > { %524 = vmatprep.subr.bf16.mxu0 %v523_v8  ;;  %v529_v19 = vpack.c.bf16 %v244_v16, %v243_v15  ;;  %v531_v20 = vpack.c.bf16 %v262_v18, %v261_v17  ;;  %v245_v21 = vld [vmem:[%s961_s20 + $0x30] sm:$0xff]  ;;  %v246_v22 = vld [vmem:[%s961_s20 + $0x38] sm:$0xff]  ;;  %v263_v23 = vld [vmem:[%s961_s20 + $0xc0] sm:$0xff]  ;;  %s685_s9 = scalar_lea.vmem %s1011_s6, 128  ;;  %p1082_p11 = scmp.ne.s32.totalorder %s1071_s24, 0 }
  0x60   : > { %v264_v24 = vld [vmem:[%s961_s20 + $0xc8] sm:$0xff]  ;;  %v238_v25 = vld [vmem:[#allocation2 + $0x8] sm:$0xff]  ;;  %v533_v26 = vpack.c.bf16 %v246_v22, %v245_v21  ;;  %v247_v28 = vld [vmem:[%s961_s20 + $0x40] sm:$0xff]  ;;  %p686_p10 = scmp.ne.s32.totalorder %s1011_s6, %s685_s9  ;;  %s778_s15 = smov [#allocation7]  }
  0x61   : > { %342 = vmatprep.mubr.f32.mxu0 %v238_v25  ;;  %v535_v27 = vpack.c.bf16 %v264_v24, %v263_v23  ;;  %v248_v29 = vld [vmem:[%s961_s20 + $0x48] sm:$0xff]  ;;  %v265_v30 = vld [vmem:[%s961_s20 + $0xd0] sm:$0xff]  ;;  %v266_v31 = vld [vmem:[%s961_s20 + $0xd8] sm:$0xff]  ;;  %s689_s10 = sshll.u32 %s778_s15, 4  ;;  %s690_s10 = int_to_ptr.vmem [resolvable:$false] %s689_s10 }
  0x62   : > { %526 = vmatpush3.bf16.msra.mxu0 %v525_v13  ;;  %v537_v32 = vpack.c.bf16 %v248_v29, %v247_v28  ;;  %v539_v33 = vpack.c.bf16 %v266_v31, %v265_v30  ;;  %v249_v34 = vld [vmem:[%s961_s20 + $0x50] sm:$0xff]  ;;  %v250_v35 = vld [vmem:[%s961_s20 + $0x58] sm:$0xff]  ;;  %v267_v36 = vld [vmem:[%s961_s20 + $0xe0] sm:$0xff]  ;;  %p687_p1 = pnand %p686_p10, %p1082_p11  ;;  %s691_s30 = scalar_lea.vmem %s690_s10, 256 }
  0x63   : > { %528 = vmatprep.subr.bf16.mxu0 %v527_v14  ;;  %v268_v37 = vld [vmem:[%s961_s20 + $0xe8] sm:$0xff]  ;;  %v541_v38 = vpack.c.bf16 %v250_v35, %v249_v34  ;;  %v251_v40 = vld [vmem:[%s961_s20 + $0x60] sm:$0xff]  ;;  %v269_v42 = vld [vmem:[%s961_s20 + $0xf0] sm:$0xff]  ;;  %p692_p9 = scmp.lt.s32.totalorder %s1011_s6, %s690_s10  ;;  %p693_p3 = scmp.lt.s32.totalorder %s691_s30, %s685_s9 }
  0x64   : > { %v543_v39 = vpack.c.bf16 %v268_v37, %v267_v36  ;;  %v252_v41 = vld [vmem:[%s961_s20 + $0x68] sm:$0xff]  ;;  %v270_v43 = vld [vmem:[%s961_s20 + $0xf8] sm:$0xff]  ;;  %v253_v46 = vld [vmem:[%s961_s20 + $0x70] sm:$0xff]  ;;  %p688_p0 = pneg %p687_p1 }
  0x65   : > { %v545_v44 = vpack.c.bf16 %v252_v41, %v251_v40  ;;  %v547_v45 = vpack.c.bf16 %v270_v43, %v269_v42  ;;  %v254_v47 = vld [vmem:[%s961_s20 + $0x78] sm:$0xff]  ;;  %v237_v49 = vld [vmem:[#allocation2] sm:$0xff]  ;;  %p694_p7 = por %p693_p3, %p692_p9 }
  0x66   : > { %530 = vmatpush3.bf16.msra.mxu0 %v529_v19  ;;  %v549_v48 = vpack.c.bf16 %v254_v47, %v253_v46  ;;  %v479_v51 = vld [vmem:[%s236_s18] ss:$0 sm:$0xff] }
  0x67   : > { %532 = vmatprep.subr.bf16.mxu0 %v531_v20  ;;  %p695_p13 = pnand %p694_p7, %p688_p0 }
  0x6a   : > { %534 = vmatpush3.bf16.msra.mxu0 %v533_v26 }
  0x6b   : > { %536 = vmatprep.subr.bf16.mxu0 %v535_v27 }
  0x6e   : > { %538 = vmatpush3.bf16.msra.mxu0 %v537_v32 }
  0x6f   : > { %540 = vmatprep.subr.bf16.mxu0 %v539_v33 }
  0x72   : > { %542 = vmatpush3.bf16.msra.mxu0 %v541_v38 }
  0x73   : > { %544 = vmatprep.subr.bf16.mxu0 %v543_v39 }
  0x76   : > { %546 = vmatpush3.bf16.msra.mxu0 %v545_v44 }
  0x77   : > { %548 = vmatprep.subr.bf16.mxu0 %v547_v45 }
  0x7a   : > { %550 = vmatpush3.bf16.msra.mxu0 %v549_v48 }
  0x7d   : > { %343 = vmatmul.mubr.f32.vlgmr.msra.gmra.mrb[0].mxu0 %v237_v49 }
 0x150   : > { %v516_v50 = vpop.f32.mrb[0].mxu0 }
 0x151   : > { %v517_v52 = vpop.f32.mrb[1].mxu0 }
 0x152   : > { %v518_v53 = vadd.f32 %v517_v52, %v516_v50 }
 0x154   : > { %v345_v54 = vadd.f32 %v518_v53, %v479_v51 }
 0x156   : > { %348 = vst [vmem:[%s233_s5] sm:$0xff] %v345_v54 }
 0x157   : > { %698 = shalt.err (!%p695_p13)
}
 0x158   : > { %s699_s8 = scalar_lea.hbm %s1009_s27, 128  ;;  %s703_s23 = scalar_lea.hbm %s1061_s3, 256 }
 0x159   : > { %p700_p2 = scmp.ne.s32.totalorder %s1009_s27, %s699_s8  ;;  %p704_p4 = scmp.lt.u32.totalorder %s1009_s27, %s1061_s3 }
 0x15a   : > { %p705_p8 = scmp.lt.u32.totalorder %s703_s23, %s699_s8  ;;  %p707_p10 = scmp.lt.u32.totalorder %s699_s8, %s1009_s27 }
 0x15b   : > { %p701_p6 = pnand %p700_p2, %p1082_p11 }
 0x15c   : > { %p706_p5 = por %p705_p8, %p704_p4 }
 0x15d   : > { %p702_p12 = pneg %p701_p6 }
 0x15e   : > { %p708_p1 = por %p707_p10, %p706_p5 }
 0x160   : > { %p709_p0 = pnand %p708_p1, %p702_p12 }
 0x162   : > { %712 = shalt.err (!%p709_p0)
}
 0x163   : > { %557 = dma.vmem_to_hbm [thread:$0]  (%p1082_p11), %s1011_s6, 128, %s1009_s27, %s350_s7  }
 0x164 PF: > { %s377_s18 = sand.u32 1, %s751_s12   ;;  %p1083_p9 = scmp.ne.s32.totalorder %s1072_s25, 0 }
 0x165   : > { %p1084_p3 = scmp.ge.s32.totalorder %s771_s17, 2  ;;  %s378_s22 = scalar_lea.sflag [#allocation4], %s377_s18 }
 0x167   : > { %p568_p7 = pnand %p1084_p3, %p1083_p9 }
 0x169   : > { %746 = dma.done.wait (!%p568_p7), %s378_s22, 128  }
 0x16a   : > { %748 = vsyncadd (!%p568_p7), %s378_s22, 4294967168  ;;  %s20_s17 = sadd.s32 1, %s771_s17   ;;  %s1085_s12 = smov %s755_s13 }
 0x16b   : > { %p17_p13 = scmp.ge.s32.totalorder %s20_s17, 4   ;;  %s1086_s13 = smov %s759_s14 }
 0x16c   : > { %s1087_s14 = smov %s918_s28  ;;  %s1088_s15 = smov %s767_s16 }
 0x16d   : > { %s1089_s16 = smov %s1091_s4  ;;  %19 = sbr.rel (!%p17_p13) target bundleno = 7 (0x7), region = 86 }
 0x174   :  { %383 = vsyncpa [#allocation3], 1 }
 0x175   :  { %385 = vsyncpa [#allocation3 + $0x1], 1 }
 0x176   :  { %386 = vsyncpa [#allocation6], 1 }
 0x177   :  { %388 = vsyncpa [#allocation6 + $0x1], 1 }
 0x178   :  { %389 = vsyncpa [#allocation4], 1 }
 0x179   :  { %391 = vsyncpa [#allocation4 + $0x1], 1 }

</bundles_post_ra>
